<compile_context>
chip_gen: v7x
topology: tpu7x:2x2x1
jax: 0.10.0
libtpu: 0.0.40
codegen_flags: <defaults>
</compile_context>

<pallas_src>
import math

import jax
import jax.numpy as jnp
from jax import lax
from jax.experimental import pallas as pl
from jax.experimental.pallas import tpu as pltpu


_GELU_C = math.sqrt(2.0 / math.pi)


def _gelu_tanh_f32(h):
    # tanh-approx GELU in f32; tanh lowers to the EUP slot (co-issues with MXU).
    return 0.5 * h * (1.0 + jnp.tanh(_GELU_C * (h + 0.044715 * (h * h * h))))


# ---------------------------------------------------------------------------
# Kernel A: resident-weights path (weights + (tm, H) hidden slab fit in VMEM).
# Grid = (row tiles,).
# ---------------------------------------------------------------------------
def _ffn_resident_kernel(x_ref, w1_ref, b1_ref, w2_ref, b2_ref, o_ref):
    x = x_ref[...]
    h = jnp.dot(x.astype(w1_ref.dtype), w1_ref[...],
                preferred_element_type=jnp.float32)
    h = h + b1_ref[...]                                   # f32 bias
    g = _gelu_tanh_f32(h)
    y = jnp.dot(g.astype(w2_ref.dtype), w2_ref[...],
                preferred_element_type=jnp.float32)
    y = y + b2_ref[...]
    # TODO(synk): training-mode dropout (pltpu.prng_seed + prng_random_bits
    # mask) not implemented; nn.Dropout is identity in eval mode.
    o_ref[...] = y.astype(o_ref.dtype)


# ---------------------------------------------------------------------------
# Kernel B: H-tiled path for production sizes.  Grid = (row tiles, H tiles);
# H is the trailing "arbitrary" axis; f32 fc2 partial sums live in a VMEM
# scratch accumulator (init at h==0, bias-add + store at h==last).
# ---------------------------------------------------------------------------
def _ffn_htiled_kernel(x_ref, w1_ref, b1_ref, w2_ref, b2_ref, o_ref, acc_ref):
    hk = pl.program_id(1)

    @pl.when(hk == 0)
    def _():
        acc_ref[...] = jnp.zeros_like(acc_ref)

    x = x_ref[...]
    h = jnp.dot(x.astype(w1_ref.dtype), w1_ref[...],
                preferred_element_type=jnp.float32)
    h = h + b1_ref[...]
    g = _gelu_tanh_f32(h)
    acc_ref[...] += jnp.dot(g.astype(w2_ref.dtype), w2_ref[...],
                            preferred_element_type=jnp.float32)

    @pl.when(hk == pl.num_programs(1) - 1)
    def _():
        # TODO(synk): training-mode dropout not implemented (eval identity).
        o_ref[...] = (acc_ref[...] + b2_ref[...]).astype(o_ref.dtype)


def _round_up(x, m):
    return ((x + m - 1) // m) * m


def _tpu_params():
    """Per-generation tiling/VMEM knobs (conservative defaults if unknown)."""
    kind = ""
    try:
        kind = jax.devices()[0].device_kind.lower()
    except Exception:
        pass
    if "v5" in kind:        # v5e: 4x128^2 MXU, 16 MiB default scoped VMEM
        return dict(align=128, max_tile=256, min_tiles=1,
                    vmem_cap=128 << 20, default_limit=16 << 20)
    if "v6" in kind:        # v6e: 2x256^2 MXU, 1 TC, 128 MiB VMEM
        return dict(align=256, max_tile=512, min_tiles=1,
                    vmem_cap=128 << 20, default_limit=32 << 20)
    if "v7" in kind or "7x" in kind:   # v7x: 2 TCs/chip, 64 MiB VMEM per TC
        return dict(align=256, max_tile=256, min_tiles=2,
                    vmem_cap=64 << 20, default_limit=32 << 20)
    return dict(align=128, max_tile=256, min_tiles=1,
                vmem_cap=64 << 20, default_limit=16 << 20)


def _pick_row_tile(M, *, align, max_tile, min_tiles):
    """Largest sensible row tile: multiple of 8, MXU-aligned when possible and
    small enough that the row grid has >= min_tiles steps (v7x dual-TC)."""
    m8 = _round_up(max(M, 8), 8)
    if m8 <= 8 * min_tiles:
        return 8 if min_tiles > 1 else m8
    cand = max_tile
    while cand > align and (cand > m8 or pl.cdiv(m8, cand) < min_tiles):
        cand //= 2
    while cand > 8 and pl.cdiv(m8, cand) < min_tiles:
        cand //= 2
    return max(8, min(cand, m8))


def _pick_h_tile(H, C, tm, wbytes, budget):
    """Largest H tile (multiple of 128 dividing H) whose per-step footprint
    (double-buffered w1/w2 slices + f32 hidden slab) fits the budget."""
    for th in (4096, 2048, 1024, 512, 256, 128):
        if H % th:
            continue
        step = 2 * (2 * C * th) * wbytes + 2 * th * 4 + tm * th * 4
        if step <= budget:
            return th
    return 128 if H % 128 == 0 else None


def _invariant_spec(shape, index_map):
    """BlockSpec for a grid-invariant operand: constant index_map (fetched
    once, stays resident) and single-buffered to halve its VMEM footprint."""
    if hasattr(pl, "Buffered"):
        return pl.BlockSpec(shape, index_map, pipeline_mode=pl.Buffered(1))
    return pl.BlockSpec(shape, index_map)


def feedforward(x, w1, b1, w2, b2, *, compute_dtype=jnp.bfloat16, h_tile=None):
    """Fused FeedForward (fc1 -> tanh GELU -> fc2; dropout = eval identity).

    x: (B, T, C); w1: (C, 4C); b1: (4C,); w2: (4C, C); b2: (C,).
    Weights are stored pre-transposed as (in, out), matching nn.Linear x @ W.T.
    compute_dtype: MXU operand dtype (bf16 in production, f32 for tight tests);
    accumulation and bias/GELU math are always f32.
    """
    B, T, C = x.shape
    H = w1.shape[1]
    M = B * T

    p = _tpu_params()
    tm = _pick_row_tile(M, align=p["align"], max_tile=p["max_tile"],
                        min_tiles=p["min_tiles"])

    # Cast weights once here (not per grid step); biases stay f32.
    w1c = w1.astype(compute_dtype)
    w2c = w2.astype(compute_dtype)
    b1c = b1.reshape(1, H).astype(jnp.float32)
    b2c = b2.reshape(1, C).astype(jnp.float32)

    # Pad the folded row axis up to a tile multiple (keeps 2-deep pipelining and
    # bounded VMEM for arbitrary M; padded rows are sliced off at the end).
    x2 = x.reshape(M, C)
    Mp = _round_up(M, tm)
    if Mp != M:
        x2 = jnp.pad(x2, ((0, Mp - M), (0, 0)))
    n_row = Mp // tm

    wbytes = jnp.dtype(compute_dtype).itemsize
    xbytes = jnp.dtype(x.dtype).itemsize

    # Resident-weights footprint: weights + biases (single-buffered), x/out
    # tiles (double-buffered), f32 (tm, H) hidden slab + (tm, C) result.
    resident_need = (2 * C * H * wbytes + (H + C) * 4
                     + 2 * tm * C * xbytes * 2
                     + tm * H * 4 + tm * C * 4)
    use_htiled = (h_tile is not None) or (resident_need > 0.45 * p["vmem_cap"])

    cost = pl.CostEstimate(
        flops=4 * Mp * C * H,            # two matmuls, 2*M*C*H each
        transcendentals=Mp * H,          # one tanh per hidden element
        bytes_accessed=(x2.size * xbytes + M * C * xbytes
                        + 2 * C * H * wbytes + (H + C) * 4))

    if not use_htiled:
        vmem_limit = int(min(max(2 * resident_need + (4 << 20),
                                 p["default_limit"]),
                             int(0.85 * p["vmem_cap"])))
        out = pl.pallas_call(
            _ffn_resident_kernel,
            out_shape=jax.ShapeDtypeStruct((Mp, C), x.dtype),
            grid_spec=pltpu.PrefetchScalarGridSpec(
                num_scalar_prefetch=0,
                grid=(n_row,),
                in_specs=[
                    pl.BlockSpec((tm, C), lambda i: (i, 0)),
                    _invariant_spec((C, H), lambda i: (0, 0)),
                    _invariant_spec((1, H), lambda i: (0, 0)),
                    _invariant_spec((H, C), lambda i: (0, 0)),
                    _invariant_spec((1, C), lambda i: (0, 0)),
                ],
                out_specs=pl.BlockSpec((tm, C), lambda i: (i, 0)),
            ),
            compiler_params=pltpu.CompilerParams(
                dimension_semantics=("parallel",),
                vmem_limit_bytes=vmem_limit,
            ),
            cost_estimate=cost,
        )(x2, w1c, b1c, w2c, b2c)
    else:
        th = h_tile if h_tile is not None else _pick_h_tile(
            H, C, tm, wbytes, budget=int(0.35 * p["vmem_cap"]))
        if th is None or H % th:
            raise ValueError("hidden dim must be a multiple of 128 for the "
                             "H-tiled path")
        n_h = H // th
        step_need = (2 * (2 * C * th) * wbytes + 2 * th * 4
                     + 2 * tm * C * xbytes * 2
                     + tm * th * 4 + tm * C * 4 + C * 4)
        vmem_limit = int(min(max(2 * step_need + (4 << 20),
                                 p["default_limit"]),
                             int(0.85 * p["vmem_cap"])))
        out = pl.pallas_call(
            _ffn_htiled_kernel,
            out_shape=jax.ShapeDtypeStruct((Mp, C), x.dtype),
            grid_spec=pltpu.PrefetchScalarGridSpec(
                num_scalar_prefetch=0,
                grid=(n_row, n_h),
                in_specs=[
                    pl.BlockSpec((tm, C), lambda i, h: (i, 0)),
                    pl.BlockSpec((C, th), lambda i, h: (0, h)),
                    pl.BlockSpec((1, th), lambda i, h: (0, h)),
                    pl.BlockSpec((th, C), lambda i, h: (h, 0)),
                    _invariant_spec((1, C), lambda i, h: (0, 0)),
                ],
                out_specs=pl.BlockSpec((tm, C), lambda i, h: (i, 0)),
                scratch_shapes=[pltpu.VMEM((tm, C), jnp.float32)],
            ),
            compiler_params=pltpu.CompilerParams(
                dimension_semantics=("parallel", "arbitrary"),
                vmem_limit_bytes=vmem_limit,
            ),
            cost_estimate=cost,
        )(x2, w1c, b1c, w2c, b2c)

    if Mp != M:
        out = out[:M]
    return out.reshape(B, T, C)


def reference_forward(x, w1, b1, w2, b2):
    """Pure-JAX reference mirroring the PyTorch forward (eval mode)."""
    h = jnp.dot(x, w1, precision=lax.Precision.HIGHEST) + b1
    h = 0.5 * h * (1.0 + jnp.tanh(_GELU_C * (h + 0.044715 * h ** 3)))
    return jnp.dot(h, w2, precision=lax.Precision.HIGHEST) + b2


if __name__ == "__main__":
    # Small, lane-dense config: n_embd=128 (hidden = 4*128 = 512), seq=8, B=2.
    B, T, C = 2, 8, 128
    H = 4 * C

    key = jax.random.PRNGKey(0)
    kx, k1, kb1, k2, kb2 = jax.random.split(key, 5)
    x = jax.random.normal(kx, (B, T, C), dtype=jnp.float32)

    # nn.Linear init ranges; weights stored pre-transposed as (in, out).
    bound1 = 1.0 / math.sqrt(C)
    w1 = jax.random.uniform(k1, (C, H), jnp.float32, -bound1, bound1)
    b1 = jax.random.uniform(kb1, (H,), jnp.float32, -bound1, bound1)
    bound2 = 1.0 / math.sqrt(H)
    w2 = jax.random.uniform(k2, (H, C), jnp.float32, -bound2, bound2)
    b2 = jax.random.uniform(kb2, (C,), jnp.float32, -bound2, bound2)

    ref = reference_forward(x, w1, b1, w2, b2)

    # 1) f32 compute path: tight check against the f32 HIGHEST reference.
    out_f32 = feedforward(x, w1, b1, w2, b2, compute_dtype=jnp.float32)
    jax.block_until_ready(out_f32)
    assert out_f32.shape == (B, T, C)
    err_f32 = float(jnp.max(jnp.abs(out_f32 - ref)))
    assert jnp.allclose(out_f32, ref, atol=1e-4, rtol=1e-4), err_f32

    # 2) Production bf16-operand path (f32 accumulation): looser tolerance.
    out_bf16 = feedforward(x, w1, b1, w2, b2, compute_dtype=jnp.bfloat16)
    jax.block_until_ready(out_bf16)
    err_bf16 = float(jnp.max(jnp.abs(out_bf16 - ref)))
    assert err_bf16 < 5e-2, err_bf16

    # 3) H-tiled accumulator path (forced small H tile), f32 compute.
    out_ht = feedforward(x, w1, b1, w2, b2, compute_dtype=jnp.float32,
                         h_tile=128)
    jax.block_until_ready(out_ht)
    err_ht = float(jnp.max(jnp.abs(out_ht - ref)))
    assert jnp.allclose(out_ht, ref, atol=1e-4, rtol=1e-4), err_ht

    print("KERNEL_OK")
</pallas_src>

<mosaic_0001>
module attributes {stable_mosaic.version = 11 : i64} {
  func.func @_ffn_resident_kernel(%arg0: i32, %arg1: memref<16x128xf32, #tpu.memory_space<vmem>>, %arg2: memref<128x512xf32, #tpu.memory_space<vmem>>, %arg3: memref<1x512xf32, #tpu.memory_space<vmem>>, %arg4: memref<512x128xf32, #tpu.memory_space<vmem>>, %arg5: memref<1x128xf32, #tpu.memory_space<vmem>>, %arg6: memref<16x128xf32, #tpu.memory_space<vmem>>) attributes {dimension_semantics = [#tpu.dimension_semantics<parallel>], iteration_bounds = array<i64: 1>, scalar_prefetch = 0 : i64, scratch_operands = 0 : i64, tpu.core_type = #tpu.core_type<tc>, window_params = [{transform_indices = @transform_0, window_bounds = array<i64: 16, 128>}, {pipeline_mode = #tpu.pipeline_mode<synchronous>, transform_indices = @transform_1, window_bounds = array<i64: 128, 512>}, {pipeline_mode = #tpu.pipeline_mode<synchronous>, transform_indices = @transform_2, window_bounds = array<i64: 1, 512>}, {pipeline_mode = #tpu.pipeline_mode<synchronous>, transform_indices = @transform_3, window_bounds = array<i64: 512, 128>}, {pipeline_mode = #tpu.pipeline_mode<synchronous>, transform_indices = @transform_4, window_bounds = array<i64: 1, 128>}, {transform_indices = @transform_5, window_bounds = array<i64: 16, 128>}]} {
    %c0 = arith.constant 0 : index
    %c0_0 = arith.constant 0 : index
    %0 = vector.load %arg1[%c0, %c0_0] : memref<16x128xf32, #tpu.memory_space<vmem>>, vector<16x128xf32>
    %c0_1 = arith.constant 0 : index
    %c0_2 = arith.constant 0 : index
    %1 = vector.load %arg2[%c0_1, %c0_2] : memref<128x512xf32, #tpu.memory_space<vmem>>, vector<128x512xf32>
    %cst = arith.constant dense<0.000000e+00> : vector<16x512xf32>
    %2 = tpu.matmul %0, %1, %cst {dimension_numbers = #tpu.dot_dimension_numbers<[1], [0], [0], [1], [0, 0, 1, 1], [], []>} : vector<16x128xf32>, vector<128x512xf32>, vector<16x512xf32> -> vector<16x512xf32>
    %c0_3 = arith.constant 0 : index
    %c0_4 = arith.constant 0 : index
    %3 = vector.load %arg3[%c0_3, %c0_4] : memref<1x512xf32, #tpu.memory_space<vmem>>, vector<1x512xf32>
    %4 = vector.broadcast %3 : vector<1x512xf32> to vector<16x512xf32>
    %5 = arith.addf %2, %4 : vector<16x512xf32>
    %cst_5 = arith.constant 5.000000e-01 : f32
    %6 = vector.broadcast %cst_5 : f32 to vector<16x512xf32>
    %7 = arith.mulf %6, %5 : vector<16x512xf32>
    %8 = arith.mulf %5, %5 : vector<16x512xf32>
    %9 = arith.mulf %8, %5 : vector<16x512xf32>
    %cst_6 = arith.constant 4.471500e-02 : f32
    %10 = vector.broadcast %cst_6 : f32 to vector<16x512xf32>
    %11 = arith.mulf %10, %9 : vector<16x512xf32>
    %12 = arith.addf %5, %11 : vector<16x512xf32>
    %cst_7 = arith.constant 0.797884583 : f32
    %13 = vector.broadcast %cst_7 : f32 to vector<16x512xf32>
    %14 = arith.mulf %13, %12 : vector<16x512xf32>
    %15 = math.tanh %14 : vector<16x512xf32>
    %cst_8 = arith.constant 1.000000e+00 : f32
    %16 = vector.broadcast %cst_8 : f32 to vector<16x512xf32>
    %17 = arith.addf %16, %15 : vector<16x512xf32>
    %18 = arith.mulf %7, %17 : vector<16x512xf32>
    %c0_9 = arith.constant 0 : index
    %c0_10 = arith.constant 0 : index
    %19 = vector.load %arg4[%c0_9, %c0_10] : memref<512x128xf32, #tpu.memory_space<vmem>>, vector<512x128xf32>
    %cst_11 = arith.constant dense<0.000000e+00> : vector<16x128xf32>
    %20 = tpu.matmul %18, %19, %cst_11 {dimension_numbers = #tpu.dot_dimension_numbers<[1], [0], [0], [1], [0, 0, 1, 1], [], []>} : vector<16x512xf32>, vector<512x128xf32>, vector<16x128xf32> -> vector<16x128xf32>
    %c0_12 = arith.constant 0 : index
    %c0_13 = arith.constant 0 : index
    %21 = vector.load %arg5[%c0_12, %c0_13] : memref<1x128xf32, #tpu.memory_space<vmem>>, vector<1x128xf32>
    %22 = vector.broadcast %21 : vector<1x128xf32> to vector<16x128xf32>
    %23 = arith.addf %20, %22 : vector<16x128xf32>
    %c0_14 = arith.constant 0 : index
    %c0_15 = arith.constant 0 : index
    %24 = vector.load %arg6[%c0_14, %c0_15] : memref<16x128xf32, #tpu.memory_space<vmem>>, vector<16x128xf32>
    tpu.vector_store %arg6[%c0_14, %c0_15], %23 {strides = array<i32>} : memref<16x128xf32, #tpu.memory_space<vmem>>, vector<16x128xf32>,
    return
  }
  func.func @transform_0(%arg0: i32) -> (i32, i32) {
    %c0_i32 = arith.constant 0 : i32
    %c0_i32_0 = arith.constant 0 : i32
    return %arg0, %c0_i32 : i32, i32
  }
  func.func @transform_1(%arg0: i32) -> (i32, i32) {
    %c0_i32 = arith.constant 0 : i32
    %c0_i32_0 = arith.constant 0 : i32
    %c0_i32_1 = arith.constant 0 : i32
    return %c0_i32, %c0_i32_0 : i32, i32
  }
  func.func @transform_2(%arg0: i32) -> (i32, i32) {
    %c0_i32 = arith.constant 0 : i32
    %c0_i32_0 = arith.constant 0 : i32
    %c0_i32_1 = arith.constant 0 : i32
    return %c0_i32, %c0_i32_0 : i32, i32
  }
  func.func @transform_3(%arg0: i32) -> (i32, i32) {
    %c0_i32 = arith.constant 0 : i32
    %c0_i32_0 = arith.constant 0 : i32
    %c0_i32_1 = arith.constant 0 : i32
    return %c0_i32, %c0_i32_0 : i32, i32
  }
  func.func @transform_4(%arg0: i32) -> (i32, i32) {
    %c0_i32 = arith.constant 0 : i32
    %c0_i32_0 = arith.constant 0 : i32
    %c0_i32_1 = arith.constant 0 : i32
    return %c0_i32, %c0_i32_0 : i32, i32
  }
  func.func @transform_5(%arg0: i32) -> (i32, i32) {
    %c0_i32 = arith.constant 0 : i32
    %c0_i32_0 = arith.constant 0 : i32
    return %arg0, %c0_i32 : i32, i32
  }
}

</mosaic_0001>

<bundles_post_ra>
// kernel: tpu_custom_call.1
= control target key start
LH: loop header
LB: loop body
LE: loop exit
PB: predicated region body
PF: predicated region fallthrough
CT: control target
= control target key end

     0   :  { %10 = vsyncpa [#allocation3], 0  ;;  %s1103_s0 = inlined_call_operand.hbm [shape: f32[16,128], index: 0, kind: input, shape index: {}]   ;;  %s1104_s1 = inlined_call_operand.hbm [shape: f32[128,512], index: 1, kind: input, shape index: {}]   ;;  %s1105_s2 = inlined_call_operand.vmem [shape: f32[1,512], index: 2, kind: input, shape index: {}]   ;;  %s1106_s3 = inlined_call_operand.hbm [shape: f32[512,128], index: 3, kind: input, shape index: {}]   ;;  %s1107_s4 = inlined_call_operand.vmem [shape: f32[1,128], index: 4, kind: input, shape index: {}]   ;;  %s1108_s5 = inlined_call_operand.hbm [shape: f32[16,128], index: 5, kind: output, shape index: {}]  }
   0x1   :  { %11 = vsyncpa [#allocation6], 0 }
   0x2   :  { %12 = vsyncpa [#allocation4], 0  ;;  %s941_s18 = smov [#allocation5]   ;;  %s847_s22 = scalar_lea.hbm %s1104_s1, 8192 }
   0x3   :  { %s30_s19 = sshll.u32 %s941_s18, 4  ;;  %p848_p0 = scmp.ne.s32.totalorder %s1104_s1, %s847_s22  ;;  %s31_s19 = int_to_ptr.vmem [resolvable:$true] %s30_s19 }
   0x4   :  { %p851_p1 = scmp.lt.u32.totalorder %s847_s22, %s1104_s1 }
   0x6   :  { %p853_p2 = pnand %p851_p1, %p848_p0 }
   0x8   :  { %856 = shalt.err (!%p853_p2)
}
   0x9   :  { %s857_s27 = scalar_lea.vmem %s31_s19, 8192  ;;  %p862_p4 = scmp.lt.s32.totalorder %s31_s19, %s31_s19 }
   0xa   :  { %p858_p3 = scmp.ne.s32.totalorder %s31_s19, %s857_s27  ;;  %p863_p5 = scmp.lt.s32.totalorder %s857_s27, %s857_s27 }
   0xc   :  { %p864_p6 = por %p863_p5, %p862_p4 }
   0xe   :  { %p865_p7 = pnand %p864_p6, %p858_p3 }
  0x10   :  { %868 = shalt.err (!%p865_p7)
}
  0x11   :  { %s942_s28 = smov 512   ;;  %s943_s29 = smov 32  }
  0x12   :  { %36 = dma.hbm_to_vmem [thread:$0]  %s1104_s1, 8192, %s31_s19, [#allocation6], %s942_s28, %s942_s28, %s943_s29  }
  0x13   :  { %s944_s7 = smov [#allocation2]   ;;  %s869_s11 = scalar_lea.hbm %s1103_s0, 256 }
  0x14   :  { %s18_s8 = sshll.u32 %s944_s7, 4  ;;  %p870_p8 = scmp.ne.s32.totalorder %s1103_s0, %s869_s11  ;;  %s19_s8 = int_to_ptr.vmem [resolvable:$true] %s18_s8 }
  0x15   :  { %p873_p9 = scmp.lt.u32.totalorder %s869_s11, %s1103_s0 }
  0x17   :  { %p875_p10 = pnand %p873_p9, %p870_p8 }
  0x19   :  { %878 = shalt.err (!%p875_p10)
}
  0x1a   :  { %s879_s16 = scalar_lea.vmem %s19_s8, 256  ;;  %p884_p12 = scmp.lt.s32.totalorder %s19_s8, %s19_s8 }
  0x1b   :  { %p880_p11 = scmp.ne.s32.totalorder %s19_s8, %s879_s16  ;;  %p885_p13 = scmp.lt.s32.totalorder %s879_s16, %s879_s16 }
  0x1d   :  { %p886_p0 = por %p885_p13, %p884_p12 }
  0x1f   :  { %p887_p1 = pnand %p886_p0, %p880_p11 }
  0x21   :  { %890 = shalt.err (!%p887_p1)
}
  0x22   :  { %s945_s1 = smov 128   ;;  %s946_s17 = smov 8  }
  0x23   :  { %24 = dma.hbm_to_vmem [thread:$0]  %s1103_s0, 256, %s19_s8, [#allocation3], %s945_s1, %s945_s1, %s946_s17  }
  0x24   :  { %s947_s20 = smov [#allocation7]   ;;  %s891_s24 = scalar_lea.hbm %s1106_s3, 8192 }
  0x25   :  { %s44_s21 = sshll.u32 %s947_s20, 4  ;;  %p892_p2 = scmp.ne.s32.totalorder %s1106_s3, %s891_s24  ;;  %s45_s21 = int_to_ptr.vmem [resolvable:$true] %s44_s21 }
  0x26   :  { %p895_p3 = scmp.lt.u32.totalorder %s891_s24, %s1106_s3 }
  0x28   :  { %p897_p4 = pnand %p895_p3, %p892_p2 }
  0x2a   :  { %900 = shalt.err (!%p897_p4)
}
  0x2b   :  { %s901_s29 = scalar_lea.vmem %s45_s21, 8192  ;;  %p906_p6 = scmp.lt.s32.totalorder %s45_s21, %s45_s21 }
  0x2c   :  { %p902_p5 = scmp.ne.s32.totalorder %s45_s21, %s901_s29  ;;  %p907_p7 = scmp.lt.s32.totalorder %s901_s29, %s901_s29 }
  0x2e   :  { %p908_p8 = por %p907_p7, %p906_p6 }
  0x30   :  { %p909_p9 = pnand %p908_p8, %p902_p5 }
  0x32   :  { %912 = shalt.err (!%p909_p9)
}
  0x33   :  { %50 = dma.hbm_to_vmem [thread:$0]  %s1106_s3, 8192, %s45_s21, [#allocation6], %s945_s1, %s945_s1, %s946_s17  }
  0x34   :  { %935 = dma.done.wait [#allocation3], 256  }
  0x35   :  { %936 = vsyncadd [#allocation3], 4294967040 }
  0x36   :  { %937 = dma.done.wait [#allocation6], 16384  }
  0x37   :  { %938 = vsyncadd [#allocation6], 4294950912  ;;  %v948_v0 = vmov 0.0   ;;  %v65_v1 = vld [vmem:[#allocation5 + $0x8] sm:$0xff]  ;;  %v67_v3 = vld [vmem:[#allocation5 + $0x18] sm:$0xff]  ;;  %s949_s8 = smov [#allocation8]  }
  0x38   :  { %214 = vmatprep.mubr.f32.mxu0 %v948_v0  ;;  %291 = vmatprep.mubr.f32.mxu1 %v948_v0  ;;  %v69_v2 = vld [vmem:[#allocation5 + $0x28] sm:$0xff]  ;;  %v71_v5 = vld [vmem:[#allocation5 + $0x38] sm:$0xff]  ;;  %v64_v6 = vld [vmem:[#allocation5] sm:$0xff]  ;;  %s604_s9 = sshll.u32 %s949_s8, 4  ;;  %s605_s9 = int_to_ptr.vmem [resolvable:$true] %s604_s9 }
  0x39   :  { %v694_v4 = vpack.c.bf16 %v69_v2, %v65_v1  ;;  %v68_v7 = vld [vmem:[#allocation5 + $0x20] sm:$0xff]  ;;  %v726_v8 = vpack.c.bf16 %v71_v5, %v67_v3  ;;  %v66_v10 = vld [vmem:[#allocation5 + $0x10] sm:$0xff]  ;;  %v73_v12 = vld [vmem:[#allocation5 + $0x48] sm:$0xff]  ;;  %p918_p11 = scmp.lt.s32.totalorder %s605_s9, %s605_s9 }
  0x3a   :  { %v696_v9 = vpack.c.bf16 %v68_v7, %v64_v6  ;;  %v70_v11 = vld [vmem:[#allocation5 + $0x30] sm:$0xff]  ;;  %v77_v14 = vld [vmem:[#allocation5 + $0x68] sm:$0xff]  ;;  %v75_v15 = vld [vmem:[#allocation5 + $0x58] sm:$0xff] }
  0x3b   :  { %695 = vmatprep.subr.bf16.mxu0 %v694_v4  ;;  %v728_v13 = vpack.c.bf16 %v70_v11, %v66_v10  ;;  %v79_v16 = vld [vmem:[#allocation5 + $0x78] sm:$0xff]  ;;  %727 = vmatprep.subr.bf16.mxu1 %v726_v8  ;;  %v698_v17 = vpack.c.bf16 %v77_v14, %v73_v12  ;;  %v72_v19 = vld [vmem:[#allocation5 + $0x40] sm:$0xff]  ;;  %v74_v21 = vld [vmem:[#allocation5 + $0x50] sm:$0xff] }
  0x3c   :  { %697 = vmatpush1.bf16.msra.mxu0 %v696_v9  ;;  %v730_v18 = vpack.c.bf16 %v79_v16, %v75_v15  ;;  %v76_v20 = vld [vmem:[#allocation5 + $0x60] sm:$0xff]  ;;  %v78_v23 = vld [vmem:[#allocation5 + $0x70] sm:$0xff]  ;;  %v81_v24 = vld [vmem:[#allocation5 + $0x88] sm:$0xff] }
  0x3d   :  { %729 = vmatpush1.bf16.msra.mxu1 %v728_v13  ;;  %v700_v22 = vpack.c.bf16 %v76_v20, %v72_v19  ;;  %v85_v25 = vld [vmem:[#allocation5 + $0xa8] sm:$0xff]  ;;  %699 = vmatprep.subr.bf16.mxu0 %v698_v17  ;;  %v732_v26 = vpack.c.bf16 %v78_v23, %v74_v21  ;;  %v83_v28 = vld [vmem:[#allocation5 + $0x98] sm:$0xff]  ;;  %v80_v30 = vld [vmem:[#allocation5 + $0x80] sm:$0xff] }
  0x3e   :  { %731 = vmatprep.subr.bf16.mxu1 %v730_v18  ;;  %v702_v27 = vpack.c.bf16 %v85_v25, %v81_v24  ;;  %v87_v29 = vld [vmem:[#allocation5 + $0xb8] sm:$0xff]  ;;  %v84_v32 = vld [vmem:[#allocation5 + $0xa0] sm:$0xff]  ;;  %v82_v33 = vld [vmem:[#allocation5 + $0x90] sm:$0xff] }
  0x3f   :  { %v734_v31 = vpack.c.bf16 %v87_v29, %v83_v28  ;;  %v86_v34 = vld [vmem:[#allocation5 + $0xb0] sm:$0xff]  ;;  %v704_v35 = vpack.c.bf16 %v84_v32, %v80_v30  ;;  %v89_v36 = vld [vmem:[#allocation5 + $0xc8] sm:$0xff]  ;;  %v91_v38 = vld [vmem:[#allocation5 + $0xd8] sm:$0xff] }
  0x40   :  { %701 = vmatpush1.bf16.msra.mxu0 %v700_v22  ;;  %v93_v37 = vld [vmem:[#allocation5 + $0xe8] sm:$0xff]  ;;  %v736_v39 = vpack.c.bf16 %v86_v34, %v82_v33  ;;  %v95_v41 = vld [vmem:[#allocation5 + $0xf8] sm:$0xff]  ;;  %v88_v42 = vld [vmem:[#allocation5 + $0xc0] sm:$0xff] }
  0x41   :  { %733 = vmatpush1.bf16.msra.mxu1 %v732_v26  ;;  %703 = vmatprep.subr.bf16.mxu0 %v702_v27  ;;  %v706_v40 = vpack.c.bf16 %v93_v37, %v89_v36  ;;  %v92_v43 = vld [vmem:[#allocation5 + $0xe0] sm:$0xff]  ;;  %v738_v44 = vpack.c.bf16 %v95_v41, %v91_v38  ;;  %v90_v45 = vld [vmem:[#allocation5 + $0xd0] sm:$0xff]  ;;  %v97_v47 = vld [vmem:[#allocation5 + $0x108] sm:$0xff] }
  0x42   :  { %735 = vmatprep.subr.bf16.mxu1 %v734_v31  ;;  %v94_v46 = vld [vmem:[#allocation5 + $0xf0] sm:$0xff]  ;;  %v101_v48 = vld [vmem:[#allocation5 + $0x128] sm:$0xff]  ;;  %v99_v49 = vld [vmem:[#allocation5 + $0x118] sm:$0xff]  ;;  %v708_v51 = vpack.c.bf16 %v92_v43, %v88_v42 }
  0x43   :  { %v103_v50 = vld [vmem:[#allocation5 + $0x138] sm:$0xff]  ;;  %v740_v52 = vpack.c.bf16 %v94_v46, %v90_v45  ;;  %v710_v53 = vpack.c.bf16 %v101_v48, %v97_v47  ;;  %v96_v54 = vld [vmem:[#allocation5 + $0x100] sm:$0xff]  ;;  %v98_v56 = vld [vmem:[#allocation5 + $0x110] sm:$0xff] }
  0x44   :  { %705 = vmatpush1.bf16.msra.mxu0 %v704_v35  ;;  %v100_v55 = vld [vmem:[#allocation5 + $0x120] sm:$0xff]  ;;  %v742_v57 = vpack.c.bf16 %v103_v50, %v99_v49  ;;  %v102_v58 = vld [vmem:[#allocation5 + $0x130] sm:$0xff]  ;;  %v105_v59 = vld [vmem:[#allocation5 + $0x148] sm:$0xff] }
  0x45   :  { %737 = vmatpush1.bf16.msra.mxu1 %v736_v39  ;;  %707 = vmatprep.subr.bf16.mxu0 %v706_v40  ;;  %v109_v60 = vld [vmem:[#allocation5 + $0x168] sm:$0xff]  ;;  %v107_v61 = vld [vmem:[#allocation5 + $0x158] sm:$0xff]  ;;  %v712_v63 = vpack.c.bf16 %v100_v55, %v96_v54  ;;  %v744_v1 = vpack.c.bf16 %v102_v58, %v98_v56  ;;  %v104_v3 = vld [vmem:[#allocation5 + $0x140] sm:$0xff] }
  0x46   :  { %739 = vmatprep.subr.bf16.mxu1 %v738_v44  ;;  %v111_v62 = vld [vmem:[#allocation5 + $0x178] sm:$0xff]  ;;  %v714_v2 = vpack.c.bf16 %v109_v60, %v105_v59  ;;  %v108_v4 = vld [vmem:[#allocation5 + $0x160] sm:$0xff]  ;;  %v106_v5 = vld [vmem:[#allocation5 + $0x150] sm:$0xff] }
  0x47   :  { %v746_v6 = vpack.c.bf16 %v111_v62, %v107_v61  ;;  %v110_v7 = vld [vmem:[#allocation5 + $0x170] sm:$0xff]  ;;  %v113_v8 = vld [vmem:[#allocation5 + $0x188] sm:$0xff]  ;;  %v115_v10 = vld [vmem:[#allocation5 + $0x198] sm:$0xff]  ;;  %v716_v12 = vpack.c.bf16 %v108_v4, %v104_v3 }
  0x48   :  { %709 = vmatpush1.bf16.msra.mxu0 %v708_v51  ;;  %v117_v9 = vld [vmem:[#allocation5 + $0x1a8] sm:$0xff]  ;;  %v119_v11 = vld [vmem:[#allocation5 + $0x1b8] sm:$0xff]  ;;  %v748_v13 = vpack.c.bf16 %v110_v7, %v106_v5  ;;  %v112_v15 = vld [vmem:[#allocation5 + $0x180] sm:$0xff] }
  0x49   :  { %741 = vmatpush1.bf16.msra.mxu1 %v740_v52  ;;  %711 = vmatprep.subr.bf16.mxu0 %v710_v53  ;;  %v718_v14 = vpack.c.bf16 %v117_v9, %v113_v8  ;;  %v116_v16 = vld [vmem:[#allocation5 + $0x1a0] sm:$0xff]  ;;  %v114_v17 = vld [vmem:[#allocation5 + $0x190] sm:$0xff]  ;;  %v750_v18 = vpack.c.bf16 %v119_v11, %v115_v10  ;;  %v121_v20 = vld [vmem:[#allocation5 + $0x1c8] sm:$0xff] }
  0x4a   :  { %743 = vmatprep.subr.bf16.mxu1 %v742_v57  ;;  %v118_v19 = vld [vmem:[#allocation5 + $0x1b0] sm:$0xff]  ;;  %v125_v21 = vld [vmem:[#allocation5 + $0x1e8] sm:$0xff]  ;;  %v123_v22 = vld [vmem:[#allocation5 + $0x1d8] sm:$0xff]  ;;  %v720_v24 = vpack.c.bf16 %v116_v16, %v112_v15 }
  0x4b   :  { %v127_v23 = vld [vmem:[#allocation5 + $0x1f8] sm:$0xff]  ;;  %v752_v25 = vpack.c.bf16 %v118_v19, %v114_v17  ;;  %v722_v26 = vpack.c.bf16 %v125_v21, %v121_v20  ;;  %v120_v27 = vld [vmem:[#allocation5 + $0x1c0] sm:$0xff]  ;;  %v122_v29 = vld [vmem:[#allocation5 + $0x1d0] sm:$0xff] }
  0x4c   :  { %713 = vmatpush1.bf16.msra.mxu0 %v712_v63  ;;  %v124_v28 = vld [vmem:[#allocation5 + $0x1e0] sm:$0xff]  ;;  %v754_v30 = vpack.c.bf16 %v127_v23, %v123_v22  ;;  %v126_v31 = vld [vmem:[#allocation5 + $0x1f0] sm:$0xff]  ;;  %v393_v33 = vld [vmem:[#allocation7 + $0x88] sm:$0xff] }
  0x4d   :  { %745 = vmatpush1.bf16.msra.mxu1 %v744_v1  ;;  %715 = vmatprep.subr.bf16.mxu0 %v714_v2  ;;  %v392_v32 = vld [vmem:[#allocation7 + $0x80] sm:$0xff]  ;;  %v425_v35 = vld [vmem:[#allocation7 + $0x188] sm:$0xff]  ;;  %v724_v36 = vpack.c.bf16 %v124_v28, %v120_v27  ;;  %v756_v37 = vpack.c.bf16 %v126_v31, %v122_v29  ;;  %v62_v44 = vld [vmem:[#allocation2] sm:$0xff] }
  0x4e   :  { %747 = vmatprep.subr.bf16.mxu1 %v746_v6  ;;  %v424_v34 = vld [vmem:[#allocation7 + $0x180] sm:$0xff]  ;;  %v758_v38 = vpack.c.bf16 %v393_v33, %v392_v32  ;;  %v377_v41 = vld [vmem:[#allocation7 + $0x8] sm:$0xff]  ;;  %v63_v47 = vld [vmem:[#allocation2 + $0x8] sm:$0xff] }
  0x4f   :  { %v790_v39 = vpack.c.bf16 %v425_v35, %v424_v34  ;;  %v376_v40 = vld [vmem:[#allocation7] sm:$0xff]  ;;  %v409_v43 = vld [vmem:[#allocation7 + $0x108] sm:$0xff]  ;;  %v394_v48 = vld [vmem:[#allocation7 + $0x90] sm:$0xff] }
  0x50   :  { %717 = vmatpush1.bf16.msra.mxu0 %v716_v12  ;;  %v408_v42 = vld [vmem:[#allocation7 + $0x100] sm:$0xff]  ;;  %v760_v45 = vpack.c.bf16 %v377_v41, %v376_v40  ;;  %v395_v49 = vld [vmem:[#allocation7 + $0x98] sm:$0xff]  ;;  %v426_v50 = vld [vmem:[#allocation7 + $0x190] sm:$0xff] }
  0x51   :  { %749 = vmatpush1.bf16.msra.mxu1 %v748_v13  ;;  %719 = vmatprep.subr.bf16.mxu0 %v718_v14  ;;  %v792_v46 = vpack.c.bf16 %v409_v43, %v408_v42  ;;  %v762_v51 = vpack.c.bf16 %v395_v49, %v394_v48  ;;  %v427_v52 = vld [vmem:[#allocation7 + $0x198] sm:$0xff]  ;;  %v378_v53 = vld [vmem:[#allocation7 + $0x10] sm:$0xff]  ;;  %v397_v60 = vld [vmem:[#allocation7 + $0xa8] sm:$0xff] }
  0x52   :  { %751 = vmatprep.subr.bf16.mxu1 %v750_v18  ;;  %v379_v54 = vld [vmem:[#allocation7 + $0x18] sm:$0xff]  ;;  %v794_v55 = vpack.c.bf16 %v427_v52, %v426_v50  ;;  %v410_v57 = vld [vmem:[#allocation7 + $0x110] sm:$0xff]  ;;  %v428_v61 = vld [vmem:[#allocation7 + $0x1a0] sm:$0xff] }
  0x53   :  { %v764_v56 = vpack.c.bf16 %v379_v54, %v378_v53  ;;  %v411_v58 = vld [vmem:[#allocation7 + $0x118] sm:$0xff]  ;;  %v429_v63 = vld [vmem:[#allocation7 + $0x1a8] sm:$0xff]  ;;  %v380_v1 = vld [vmem:[#allocation7 + $0x20] sm:$0xff] }
  0x54   :  { %721 = vmatpush1.bf16.msra.mxu0 %v720_v24  ;;  %v796_v59 = vpack.c.bf16 %v411_v58, %v410_v57  ;;  %v381_v2 = vld [vmem:[#allocation7 + $0x28] sm:$0xff]  ;;  %v798_v3 = vpack.c.bf16 %v429_v63, %v428_v61  ;;  %v412_v5 = vld [vmem:[#allocation7 + $0x120] sm:$0xff]  ;;  %v398_v8 = vld [vmem:[#allocation7 + $0xb0] sm:$0xff] }
  0x55   :  { %753 = vmatpush1.bf16.msra.mxu1 %v752_v25  ;;  %723 = vmatprep.subr.bf16.mxu0 %v722_v26  ;;  %v768_v4 = vpack.c.bf16 %v381_v2, %v380_v1  ;;  %v413_v6 = vld [vmem:[#allocation7 + $0x128] sm:$0xff]  ;;  %v399_v9 = vld [vmem:[#allocation7 + $0xb8] sm:$0xff]  ;;  %v430_v10 = vld [vmem:[#allocation7 + $0x1b0] sm:$0xff] }
  0x56   :  { %755 = vmatprep.subr.bf16.mxu1 %v754_v30  ;;  %v800_v7 = vpack.c.bf16 %v413_v6, %v412_v5  ;;  %v770_v11 = vpack.c.bf16 %v399_v9, %v398_v8  ;;  %v431_v12 = vld [vmem:[#allocation7 + $0x1b8] sm:$0xff]  ;;  %v382_v13 = vld [vmem:[#allocation7 + $0x30] sm:$0xff]  ;;  %v400_v20 = vld [vmem:[#allocation7 + $0xc0] sm:$0xff] }
  0x57   :  { %v383_v14 = vld [vmem:[#allocation7 + $0x38] sm:$0xff]  ;;  %v802_v15 = vpack.c.bf16 %v431_v12, %v430_v10  ;;  %v414_v17 = vld [vmem:[#allocation7 + $0x130] sm:$0xff]  ;;  %v401_v21 = vld [vmem:[#allocation7 + $0xc8] sm:$0xff] }
  0x58   :  { %725 = vmatpush1.bf16.msra.mxu0 %v724_v36  ;;  %v772_v16 = vpack.c.bf16 %v383_v14, %v382_v13  ;;  %v415_v18 = vld [vmem:[#allocation7 + $0x138] sm:$0xff]  ;;  %v432_v22 = vld [vmem:[#allocation7 + $0x1c0] sm:$0xff]  ;;  %v774_v23 = vpack.c.bf16 %v401_v21, %v400_v20  ;;  %v433_v24 = vld [vmem:[#allocation7 + $0x1c8] sm:$0xff] }
  0x59   :  { %757 = vmatpush1.bf16.msra.mxu1 %v756_v37  ;;  %759 = vmatprep.subr.bf16.mxu0 %v758_v38  ;;  %v804_v19 = vpack.c.bf16 %v415_v18, %v414_v17  ;;  %v384_v25 = vld [vmem:[#allocation7 + $0x40] sm:$0xff]  ;;  %v385_v26 = vld [vmem:[#allocation7 + $0x48] sm:$0xff]  ;;  %v806_v27 = vpack.c.bf16 %v433_v24, %v432_v22  ;;  %v402_v32 = vld [vmem:[#allocation7 + $0xd0] sm:$0xff] }
  0x5a   :  { %791 = vmatprep.subr.bf16.mxu1 %v790_v39  ;;  %v776_v28 = vpack.c.bf16 %v385_v26, %v384_v25  ;;  %v416_v29 = vld [vmem:[#allocation7 + $0x140] sm:$0xff]  ;;  %v417_v30 = vld [vmem:[#allocation7 + $0x148] sm:$0xff]  ;;  %v403_v33 = vld [vmem:[#allocation7 + $0xd8] sm:$0xff] }
  0x5b   :  { %215 = vmatmul.mubr.f32.vlgmr.msra.gmra.mrb[0].mxu0 %v62_v44  ;;  %v808_v31 = vpack.c.bf16 %v417_v30, %v416_v29  ;;  %v434_v34 = vld [vmem:[#allocation7 + $0x1d0] sm:$0xff]  ;;  %v778_v35 = vpack.c.bf16 %v403_v33, %v402_v32  ;;  %v435_v36 = vld [vmem:[#allocation7 + $0x1d8] sm:$0xff]  ;;  %v437_v48 = vld [vmem:[#allocation7 + $0x1e8] sm:$0xff] }
  0x5c   :  { %292 = vmatmul.mubr.f32.vlgmr.msra.gmra.mrb[0].mxu1 %v62_v44  ;;  %220 = vmatprep.mubr.f32.mxu0 %v948_v0  ;;  %v386_v37 = vld [vmem:[#allocation7 + $0x50] sm:$0xff]  ;;  %v387_v38 = vld [vmem:[#allocation7 + $0x58] sm:$0xff]  ;;  %v810_v39 = vpack.c.bf16 %v435_v36, %v434_v34  ;;  %v404_v44 = vld [vmem:[#allocation7 + $0xe0] sm:$0xff] }
  0x5d   :  { %297 = vmatprep.mubr.f32.mxu1 %v948_v0  ;;  %761 = vmatpush3.bf16.msra.mxu0 %v760_v45  ;;  %v396_v0 = vld [vmem:[#allocation7 + $0xa0] sm:$0xff]  ;;  %v780_v40 = vpack.c.bf16 %v387_v38, %v386_v37  ;;  %v418_v41 = vld [vmem:[#allocation7 + $0x150] sm:$0xff]  ;;  %v419_v42 = vld [vmem:[#allocation7 + $0x158] sm:$0xff] }
  0x5e   :  { %793 = vmatpush3.bf16.msra.mxu1 %v792_v46  ;;  %763 = vmatprep.subr.bf16.mxu0 %v762_v51  ;;  %v766_v62 = vpack.c.bf16 %v397_v60, %v396_v0  ;;  %v812_v43 = vpack.c.bf16 %v419_v42, %v418_v41  ;;  %v405_v45 = vld [vmem:[#allocation7 + $0xe8] sm:$0xff]  ;;  %v436_v46 = vld [vmem:[#allocation7 + $0x1e0] sm:$0xff]  ;;  %v407_v57 = vld [vmem:[#allocation7 + $0xf8] sm:$0xff] }
  0x5f   :  { %221 = vmatmul.mubr.f32.gmra.mrb[2].mxu0 %v63_v47  ;;  %795 = vmatprep.subr.bf16.mxu1 %v794_v55  ;;  %v388_v49 = vld [vmem:[#allocation7 + $0x60] sm:$0xff]  ;;  %v389_v50 = vld [vmem:[#allocation7 + $0x68] sm:$0xff]  ;;  %v814_v51 = vpack.c.bf16 %v437_v48, %v436_v46  ;;  %v438_v58 = vld [vmem:[#allocation7 + $0x1f0] sm:$0xff] }
  0x60   :  { %298 = vmatmul.mubr.f32.gmra.mrb[2].mxu1 %v63_v47  ;;  %v782_v47 = vpack.c.bf16 %v405_v45, %v404_v44  ;;  %v784_v52 = vpack.c.bf16 %v389_v50, %v388_v49  ;;  %v420_v53 = vld [vmem:[#allocation7 + $0x160] sm:$0xff]  ;;  %v421_v54 = vld [vmem:[#allocation7 + $0x168] sm:$0xff]  ;;  %v439_v0 = vld [vmem:[#allocation7 + $0x1f8] sm:$0xff] }
  0x61   :  { %765 = vmatpush3.bf16.msra.mxu0 %v764_v56  ;;  %v816_v55 = vpack.c.bf16 %v421_v54, %v420_v53  ;;  %v406_v56 = vld [vmem:[#allocation7 + $0xf0] sm:$0xff]  ;;  %v391_v61 = vld [vmem:[#allocation7 + $0x78] sm:$0xff] }
  0x62   :  { %797 = vmatpush3.bf16.msra.mxu1 %v796_v59  ;;  %767 = vmatprep.subr.bf16.mxu0 %v766_v62  ;;  %v786_v59 = vpack.c.bf16 %v407_v57, %v406_v56  ;;  %v390_v60 = vld [vmem:[#allocation7 + $0x70] sm:$0xff]  ;;  %v818_v62 = vpack.c.bf16 %v439_v0, %v438_v58  ;;  %v423_v2 = vld [vmem:[#allocation7 + $0x178] sm:$0xff] }
  0x63   :  { %799 = vmatprep.subr.bf16.mxu1 %v798_v3  ;;  %v788_v63 = vpack.c.bf16 %v391_v61, %v390_v60  ;;  %v422_v1 = vld [vmem:[#allocation7 + $0x170] sm:$0xff] }
  0x64   :  { %v820_v3 = vpack.c.bf16 %v423_v2, %v422_v1 }
  0x65   :  { %769 = vmatpush3.bf16.msra.mxu0 %v768_v4  ;;  %v130_v4 = vlaneseq }
  0x66   :  { %801 = vmatpush3.bf16.msra.mxu1 %v800_v7  ;;  %771 = vmatprep.subr.bf16.mxu0 %v770_v11  ;;  %v128_v7 = vld [vmem:[%s1105_s2] sm:$0xf] }
  0x67   :  { %803 = vmatprep.subr.bf16.mxu1 %v802_v15  ;;  %v131_v5 = vshrl.u32 %v130_v4, 7 }
  0x69   :  { %773 = vmatpush3.bf16.msra.mxu0 %v772_v16  ;;  %v132_v6 = vsub.s32 0, %v131_v5  ;;  %v140_v8 = vsub.s32 2, %v131_v5  ;;  %v136_v9 = vsub.s32 1, %v131_v5  ;;  %v144_v10 = vsub.s32 3, %v131_v5 }
  0x6a   :  { %805 = vmatpush3.bf16.msra.mxu1 %v804_v19  ;;  %775 = vmatprep.subr.bf16.mxu0 %v774_v23 }
  0x6b   :  { %807 = vmatprep.subr.bf16.mxu1 %v806_v27  ;;  %v133_v11 = vrot.slane %v128_v7, %v132_v6  ;;  %v141_v12 = vrot.slane %v128_v7, %v140_v8  ;;  %v137_v13 = vrot.slane %v128_v7, %v136_v9  ;;  %v145_v14 = vrot.slane %v128_v7, %v144_v10 }
  0x6d   :  { %777 = vmatpush3.bf16.msra.mxu0 %v776_v28 }
  0x6e   :  { %809 = vmatpush3.bf16.msra.mxu1 %v808_v31  ;;  %779 = vmatprep.subr.bf16.mxu0 %v778_v35 }
  0x6f   :  { %811 = vmatprep.subr.bf16.mxu1 %v810_v39 }
  0x71   :  { %781 = vmatpush3.bf16.msra.mxu0 %v780_v40 }
  0x72   :  { %813 = vmatpush3.bf16.msra.mxu1 %v812_v43  ;;  %783 = vmatprep.subr.bf16.mxu0 %v782_v47 }
  0x73   :  { %815 = vmatprep.subr.bf16.mxu1 %v814_v51 }
  0x75   :  { %785 = vmatpush3.bf16.msra.mxu0 %v784_v52 }
  0x76   :  { %817 = vmatpush3.bf16.msra.mxu1 %v816_v55  ;;  %787 = vmatprep.subr.bf16.mxu0 %v786_v59 }
  0x77   :  { %819 = vmatprep.subr.bf16.mxu1 %v818_v62 }
  0x79   :  { %789 = vmatpush3.bf16.msra.mxu0 %v788_v63 }
  0x7a   :  { %821 = vmatpush3.bf16.msra.mxu1 %v820_v3 }
 0x12e   :  { %v216_v15 = vpop.f32.mrb[0].mxu0 }
 0x12f   :  { %v1029_v16 = vadd.f32 %v216_v15, %v133_v11  ;;  %v293_v17 = vpop.f32.mrb[0].mxu1  ;;  %v218_v18 = vpop.f32.mrb[1].mxu0 }
 0x130   :  { %v1031_v19 = vadd.f32 %v293_v17, %v141_v12  ;;  %v1033_v20 = vadd.f32 %v218_v18, %v137_v13  ;;  %v295_v21 = vpop.f32.mrb[1].mxu1 }
 0x131   :  { %v312_v22 = vmul.f32 %v1029_v16, %v1029_v16  ;;  %v1037_v23 = vadd.f32 %v295_v21, %v145_v14  ;;  %v304_v17 = vmul.f32 0.5, %v1029_v16 }
 0x132   :  { %v314_v24 = vmul.f32 %v1031_v19, %v1031_v19  ;;  %v313_v25 = vmul.f32 %v1033_v20, %v1033_v20  ;;  %v222_v26 = vpop.f32.mrb[2].mxu0 }
 0x133   :  { %v320_v27 = vmul.f32 %v312_v22, %v1029_v16  ;;  %v315_v28 = vmul.f32 %v1037_v23, %v1037_v23  ;;  %v1046_v29 = vadd.f32 %v222_v26, %v133_v11  ;;  %v299_v30 = vpop.f32.mrb[2].mxu1  ;;  %v224_v31 = vpop.f32.mrb[3].mxu0  ;;  %v307_v18 = vmul.f32 0.5, %v1037_v23 }
 0x134   :  { %v322_v32 = vmul.f32 %v314_v24, %v1031_v19  ;;  %v321_v33 = vmul.f32 %v313_v25, %v1033_v20  ;;  %v1050_v34 = vadd.f32 %v299_v30, %v141_v12  ;;  %v1052_v35 = vadd.f32 %v224_v31, %v137_v13  ;;  %v301_v36 = vpop.f32.mrb[3].mxu1 }
 0x135   :  { %v328_v37 = vmul.f32 0.044715, %v320_v27  ;;  %v323_v38 = vmul.f32 %v315_v28, %v1037_v23  ;;  %v316_v39 = vmul.f32 %v1046_v29, %v1046_v29  ;;  %v1057_v40 = vadd.f32 %v301_v36, %v145_v14 }
 0x136   :  { %v330_v41 = vmul.f32 0.044715, %v322_v32  ;;  %v329_v42 = vmul.f32 0.044715, %v321_v33  ;;  %v318_v43 = vmul.f32 %v1050_v34, %v1050_v34  ;;  %v317_v44 = vmul.f32 %v1052_v35, %v1052_v35 }
 0x137   :  { %v336_v45 = vadd.f32 %v328_v37, %v1029_v16  ;;  %v331_v46 = vmul.f32 0.044715, %v323_v38  ;;  %v324_v47 = vmul.f32 %v316_v39, %v1046_v29  ;;  %v319_v48 = vmul.f32 %v1057_v40, %v1057_v40 }
 0x138   :  { %v338_v49 = vadd.f32 %v330_v41, %v1031_v19  ;;  %v337_v50 = vadd.f32 %v329_v42, %v1033_v20  ;;  %v326_v51 = vmul.f32 %v318_v43, %v1050_v34  ;;  %v325_v52 = vmul.f32 %v317_v44, %v1052_v35 }
 0x139   :  { %v344_v53 = vmul.f32 0.7978846, %v336_v45  ;;  %v339_v54 = vadd.f32 %v331_v46, %v1037_v23  ;;  %v332_v55 = vmul.f32 0.044715, %v324_v47  ;;  %v327_v56 = vmul.f32 %v319_v48, %v1057_v40 }
 0x13a   :  { %v346_v57 = vmul.f32 0.7978846, %v338_v49  ;;  %v345_v58 = vmul.f32 0.7978846, %v337_v50  ;;  %v334_v59 = vmul.f32 0.044715, %v326_v51 }
 0x13b   :  { %831 = vtanh.f32 %v344_v53  ;;  %v347_v0 = vmul.f32 0.7978846, %v339_v54  ;;  %v340_v60 = vadd.f32 %v332_v55, %v1046_v29  ;;  %v333_v61 = vmul.f32 0.044715, %v325_v52 }
 0x13c   :  { %833 = vtanh.f32 %v346_v57  ;;  %v342_v62 = vadd.f32 %v334_v59, %v1050_v34  ;;  %v335_v63 = vmul.f32 0.044715, %v327_v56  ;;  %v305_v13 = vmul.f32 0.5, %v1033_v20 }
 0x13d   :  { %v348_v1 = vmul.f32 0.7978846, %v340_v60  ;;  %v341_v2 = vadd.f32 %v333_v61, %v1052_v35  ;;  %835 = vtanh.f32 %v345_v58  ;;  %v306_v24 = vmul.f32 0.5, %v1031_v19 }
 0x13e   :  { %v350_v3 = vmul.f32 0.7978846, %v342_v62  ;;  %v343_v4 = vadd.f32 %v335_v63, %v1057_v40  ;;  %837 = vtanh.f32 %v347_v0  ;;  %v309_v20 = vmul.f32 0.5, %v1052_v35 }
 0x13f   :  { %v349_v5 = vmul.f32 0.7978846, %v341_v2  ;;  %839 = vtanh.f32 %v348_v1  ;;  %v311_v16 = vmul.f32 0.5, %v1057_v40  ;;  %v308_v37 = vmul.f32 0.5, %v1046_v29  ;;  %v617_v40 = vld [vmem:[%s1107_s4] ss:$0 sm:$0xff] }
 0x140   :  { %v351_v6 = vmul.f32 0.7978846, %v343_v4  ;;  %841 = vtanh.f32 %v350_v3  ;;  %v310_v38 = vmul.f32 0.5, %v1050_v34  ;;  %s913_s4 = scalar_lea.vmem %s605_s9, 256 }
 0x141   :  { %843 = vtanh.f32 %v349_v5  ;;  %p914_p10 = scmp.ne.s32.totalorder %s605_s9, %s913_s4  ;;  %p919_p12 = scmp.lt.s32.totalorder %s913_s4, %s913_s4 }
 0x142   :  { %845 = vtanh.f32 %v351_v6 }
 0x143   :  { %p920_p13 = por %p919_p12, %p918_p11 }
 0x145   :  { %v832_v7 = vpop.eup %831  ;;  %p921_p0 = pnand %p920_p13, %p914_p10 }
 0x146   :  { %v834_v8 = vpop.eup %833  ;;  %v360_v10 = vadd.f32 1.0, %v832_v7 }
 0x147   :  { %v836_v9 = vpop.eup %835  ;;  %v362_v12 = vadd.f32 1.0, %v834_v8 }
 0x148   :  { %v838_v11 = vpop.eup %837  ;;  %v361_v14 = vadd.f32 1.0, %v836_v9  ;;  %v368_v27 = vmul.f32 %v360_v10, %v304_v17 }
 0x149   :  { %v840_v15 = vpop.eup %839  ;;  %v363_v21 = vadd.f32 1.0, %v838_v11  ;;  %v370_v32 = vmul.f32 %v362_v12, %v306_v24 }
 0x14a   :  { %v842_v22 = vpop.eup %841  ;;  %v369_v25 = vmul.f32 %v361_v14, %v305_v13  ;;  %v364_v30 = vadd.f32 1.0, %v840_v15 }
 0x14b   :  { %v844_v26 = vpop.eup %843  ;;  %v371_v28 = vmul.f32 %v363_v21, %v307_v18  ;;  %v366_v36 = vadd.f32 1.0, %v842_v22 }
 0x14c   :  { %v846_v31 = vpop.eup %845  ;;  %511 = vmatprep.mubr.f32.mxu0 %v369_v25  ;;  %v365_v33 = vadd.f32 1.0, %v844_v26  ;;  %v372_v41 = vmul.f32 %v364_v30, %v308_v37 }
 0x14d   :  { %586 = vmatprep.mubr.f32.mxu1 %v371_v28  ;;  %512 = vmatmul.mubr.f32.vlgmr.msra.gmra.mrb[4].mxu0 %v368_v27  ;;  %v367_v23 = vadd.f32 1.0, %v846_v31  ;;  %v374_v42 = vmul.f32 %v366_v36, %v310_v38 }
 0x14e   :  { %587 = vmatmul.mubr.f32.vlgmr.msra.gmra.mrb[4].mxu1 %v370_v32  ;;  %v373_v19 = vmul.f32 %v365_v33, %v309_v20 }
 0x14f   :  { %v375_v39 = vmul.f32 %v367_v23, %v311_v16 }
 0x150   :  { %516 = vmatprep.mubr.f32.mxu0 %v373_v19 }
 0x151   :  { %591 = vmatprep.mubr.f32.mxu1 %v375_v39  ;;  %517 = vmatmul.mubr.f32.gmra.mrb[6].mxu0 %v372_v41 }
 0x152   :  { %592 = vmatmul.mubr.f32.gmra.mrb[6].mxu1 %v374_v42 }
 0x220   :  { %v650_v35 = vpop.f32.mrb[4].mxu0 }
 0x221   :  { %v688_v43 = vpop.f32.mrb[4].mxu1  ;;  %v651_v44 = vpop.f32.mrb[5].mxu0 }
 0x222   :  { %v652_v45 = vadd.f32 %v651_v44, %v650_v35  ;;  %v689_v29 = vpop.f32.mrb[5].mxu1 }
 0x223   :  { %v690_v46 = vadd.f32 %v689_v29, %v688_v43 }
 0x224   :  { %v514_v47 = vadd.f32 %v652_v45, %v617_v40  ;;  %v653_v48 = vpop.f32.mrb[6].mxu0 }
 0x225   :  { %v691_v34 = vpop.f32.mrb[6].mxu1  ;;  %v654_v49 = vpop.f32.mrb[7].mxu0 }
 0x226   :  { %v589_v50 = vadd.f32 %v690_v46, %v514_v47  ;;  %v655_v51 = vadd.f32 %v654_v49, %v653_v48  ;;  %v692_v52 = vpop.f32.mrb[7].mxu1 }
 0x227   :  { %v693_v53 = vadd.f32 %v692_v52, %v691_v34 }
 0x228   :  { %597 = vst [vmem:[#allocation8] sm:$0xff] %v589_v50  ;;  %v519_v54 = vadd.f32 %v655_v51, %v617_v40 }
 0x22a   :  { %v594_v55 = vadd.f32 %v693_v53, %v519_v54 }
 0x22c   :  { %598 = vst [vmem:[#allocation8 + $0x8] sm:$0xff] %v594_v55 }
 0x22d   :  { %924 = shalt.err (!%p921_p0)
}
 0x22e   :  { %s925_s12 = scalar_lea.hbm %s1108_s5, 256 }
 0x22f   :  { %p926_p1 = scmp.ne.s32.totalorder %s1108_s5, %s925_s12  ;;  %p929_p2 = scmp.lt.u32.totalorder %s925_s12, %s1108_s5 }
 0x231   :  { %p931_p3 = pnand %p929_p2, %p926_p1 }
 0x233   :  { %934 = shalt.err (!%p931_p3)
}
 0x234   :  { %610 = dma.vmem_to_hbm [thread:$0]  %s605_s9, 256, %s1108_s5, [#allocation4], %s945_s1, %s945_s1, %s946_s17  }
 0x235   :  { %939 = dma.done.wait [#allocation4], 256  }
 0x236   :  { %940 = vsyncadd [#allocation4], 4294967040 }
 0x237   :  { %614 = vsyncpa [#allocation3], 1 }
 0x238   :  { %615 = vsyncpa [#allocation6], 1 }
 0x239   :  { %616 = vsyncpa [#allocation4], 1 }

</bundles_post_ra>
